<compile_context>
chip_gen: v7x
topology: tpu7x:2x2x1
jax: 0.10.0
libtpu: 0.0.40
codegen_flags: <defaults>
</compile_context>

<pallas_src>
import jax
import jax.numpy as jnp
from jax import lax
from jax.experimental import pallas as pl
from jax.experimental.pallas import tpu as pltpu

NUM_INPUTS = 2
NUM_OUTPUTS = 2
HIDDEN1 = 64
HIDDEN2 = 32
LN_EPS = 1e-5

LANE = 128      # TPU lane width; batch is padded to a multiple of this
MAX_TB = 512    # batch-tile cap (multiple of 128); keeps vreg pressure modest


def _round_up(n, m):
    return ((n + m - 1) // m) * m


def _layer_norm_t(h, gamma=None, beta=None):
    """LayerNorm over the feature axis (axis 0 in the transposed layout)."""
    mu = jnp.mean(h, axis=0, keepdims=True)
    var = jnp.mean(jnp.square(h - mu), axis=0, keepdims=True)
    hn = (h - mu) * lax.rsqrt(var + LN_EPS)
    if gamma is not None:
        hn = hn * gamma + beta
    return hn


def simple_nn_kernel(xt_ref,
                     w1_ref, b1_ref,
                     w2f_ref, b2f_ref, g2_ref, be2_ref,
                     w3_ref, b3_ref,
                     o_ref):
    xt = xt_ref[...]                                          # (2, TB) f32

    # fc1 (in=2) on the VPU: outer-product FMA instead of a K=2 MXU matmul.
    h = (w1_ref[:, 0:1] * xt[0:1, :]
         + w1_ref[:, 1:2] * xt[1:2, :]
         + b1_ref[...])                                       # (64, TB)
    h = jnp.maximum(h, 0.0)

    # LayerNorm1 WITHOUT affine: gamma1/beta1 are folded into (w2f, b2f).
    h = _layer_norm_t(h)

    # Dropout(p=0.5): identity in inference/eval mode.
    # TODO(synk): training-mode dropout (pltpu.prng_random_bits mask + 2x scale) not implemented.

    # fc2 (64 -> 32) on the MXU; batch stays on the lane axis.
    h = jnp.dot(w2f_ref[...], h,
                preferred_element_type=jnp.float32) + b2f_ref[...]   # (32, TB)
    h = _layer_norm_t(h, g2_ref[...], be2_ref[...])
    h = jnp.maximum(h, 0.0)

    # fc3 (out=2) on the VPU + XLU sublane reduction (no degenerate N=2 MXU
    # matmul); single lane-dense full-block store.
    o0 = jnp.sum(h * w3_ref[:, 0:1], axis=0, keepdims=True) + b3_ref[0:1, :]  # (1, TB)
    o1 = jnp.sum(h * w3_ref[:, 1:2], axis=0, keepdims=True) + b3_ref[1:2, :]  # (1, TB)
    o_ref[...] = jnp.concatenate([o0, o1], axis=0).astype(o_ref.dtype)        # (2, TB)


def simple_nn_forward(x, params):
    (w1, b1, g1, be1, w2, b2, g2, be2, w3, b3) = params
    B = x.shape[0]

    # Fold LayerNorm1's affine into fc2 (exact, once, wrapper-side):
    #   fc2(g1*z + be1) = (w2 * g1^T) @ z + (w2 @ be1 + b2)
    w2f = w2 * g1.T                                           # (32, 64)
    b2f = w2 @ be1 + b2                                       # (32, 1)

    # Lane-dense batch padding: pad to a multiple of 128 so every input/output
    # tile is a full-lane, unmasked load/store.  Tile TB <= 512.
    Bp = _round_up(max(B, LANE), LANE)
    TB = Bp if Bp <= MAX_TB else MAX_TB
    Bp = _round_up(Bp, TB)

    xt = x.T.astype(jnp.float32)                              # (2, B), batch on lanes
    if Bp != B:
        xt = jnp.pad(xt, ((0, 0), (0, Bp - B)))

    def _resident(a):
        # Full-array block with a constant index_map: stays VMEM-resident
        # across all batch-grid steps (no re-DMA).
        return pl.BlockSpec(a.shape, lambda i: (0, 0))

    out_t = pl.pallas_call(
        simple_nn_kernel,
        out_shape=jax.ShapeDtypeStruct((NUM_OUTPUTS, Bp), jnp.float32),
        grid=(Bp // TB,),
        in_specs=[pl.BlockSpec((NUM_INPUTS, TB), lambda i: (0, i)),
                  _resident(w1), _resident(b1),
                  _resident(w2f), _resident(b2f), _resident(g2), _resident(be2),
                  _resident(w3), _resident(b3)],
        out_specs=pl.BlockSpec((NUM_OUTPUTS, TB), lambda i: (0, i)),
        compiler_params=pltpu.CompilerParams(
            dimension_semantics=("parallel",)),
    )(xt, w1, b1, w2f, b2f, g2, be2, w3, b3)

    return out_t[:, :B].T                                     # (B, 2)


def init_params(key):
    """Deterministic synthetic init (shapes documented at top of file)."""
    ks = jax.random.split(key, 6)

    def uni(k, shape, fan_in):
        bound = 1.0 / jnp.sqrt(fan_in)
        return jax.random.uniform(k, shape, jnp.float32, -bound, bound)

    w1 = uni(ks[0], (HIDDEN1, NUM_INPUTS), NUM_INPUTS)        # (64, 2)  out,in
    b1 = uni(ks[1], (HIDDEN1, 1), NUM_INPUTS)
    w2 = uni(ks[2], (HIDDEN2, HIDDEN1), HIDDEN1)              # (32, 64) out,in
    b2 = uni(ks[3], (HIDDEN2, 1), HIDDEN1)
    w3 = uni(ks[4], (HIDDEN2, NUM_OUTPUTS), HIDDEN2)          # (32, 2)  in,out
    b3 = uni(ks[5], (NUM_OUTPUTS, 1), HIDDEN2)

    g1 = jnp.ones((HIDDEN1, 1), jnp.float32)
    be1 = jnp.zeros((HIDDEN1, 1), jnp.float32)
    g2 = jnp.ones((HIDDEN2, 1), jnp.float32)
    be2 = jnp.zeros((HIDDEN2, 1), jnp.float32)

    return (w1, b1, g1, be1, w2, b2, g2, be2, w3, b3)


def reference_forward(x, params):
    """Pure-JAX reference in batch-major layout (matches PyTorch op order)."""
    (w1, b1, g1, be1, w2, b2, g2, be2, w3, b3) = params

    def ln(h, g, bta):
        mu = jnp.mean(h, axis=-1, keepdims=True)
        var = jnp.mean(jnp.square(h - mu), axis=-1, keepdims=True)
        return (h - mu) * lax.rsqrt(var + LN_EPS) * g + bta

    h = jnp.maximum(x @ w1.T + b1.T, 0.0)
    h = ln(h, g1.T, be1.T)
    # dropout: identity (eval)
    h = h @ w2.T + b2.T
    h = ln(h, g2.T, be2.T)
    h = jnp.maximum(h, 0.0)
    return h @ w3 + b3.T


if __name__ == "__main__":
    key = jax.random.PRNGKey(0)
    kx, kp = jax.random.split(key)

    batch_size = 10  # mirrors the PyTorch script's batch_size
    x = jax.random.uniform(kx, (batch_size, NUM_INPUTS), jnp.float32)

    params = init_params(kp)

    out = jax.block_until_ready(simple_nn_forward(x, params))
    ref = reference_forward(x, params)

    assert out.shape == (batch_size, NUM_OUTPUTS)
    assert jnp.allclose(out, ref, atol=1e-4, rtol=1e-4), "Pallas output mismatch vs reference"

    print("KERNEL_OK")
</pallas_src>

<mosaic_0001>
module attributes {stable_mosaic.version = 11 : i64} {
  func.func @simple_nn_kernel(%arg0: i32, %arg1: memref<2x128xf32, #tpu.memory_space<vmem>>, %arg2: memref<64x2xf32, #tpu.memory_space<vmem>>, %arg3: memref<64x1xf32, #tpu.memory_space<vmem>>, %arg4: memref<32x64xf32, #tpu.memory_space<vmem>>, %arg5: memref<32x1xf32, #tpu.memory_space<vmem>>, %arg6: memref<32x1xf32, #tpu.memory_space<vmem>>, %arg7: memref<32x1xf32, #tpu.memory_space<vmem>>, %arg8: memref<32x2xf32, #tpu.memory_space<vmem>>, %arg9: memref<2x1xf32, #tpu.memory_space<vmem>>, %arg10: memref<2x128xf32, #tpu.memory_space<vmem>>) attributes {dimension_semantics = [#tpu.dimension_semantics<parallel>], iteration_bounds = array<i64: 1>, scalar_prefetch = 0 : i64, scratch_operands = 0 : i64, tpu.core_type = #tpu.core_type<tc>, window_params = [{transform_indices = @transform_0, window_bounds = array<i64: 2, 128>}, {pipeline_mode = #tpu.pipeline_mode<synchronous>, transform_indices = @transform_1, window_bounds = array<i64: 64, 2>}, {pipeline_mode = #tpu.pipeline_mode<synchronous>, transform_indices = @transform_2, window_bounds = array<i64: 64, 1>}, {pipeline_mode = #tpu.pipeline_mode<synchronous>, transform_indices = @transform_3, window_bounds = array<i64: 32, 64>}, {pipeline_mode = #tpu.pipeline_mode<synchronous>, transform_indices = @transform_4, window_bounds = array<i64: 32, 1>}, {pipeline_mode = #tpu.pipeline_mode<synchronous>, transform_indices = @transform_5, window_bounds = array<i64: 32, 1>}, {pipeline_mode = #tpu.pipeline_mode<synchronous>, transform_indices = @transform_6, window_bounds = array<i64: 32, 1>}, {pipeline_mode = #tpu.pipeline_mode<synchronous>, transform_indices = @transform_7, window_bounds = array<i64: 32, 2>}, {pipeline_mode = #tpu.pipeline_mode<synchronous>, transform_indices = @transform_8, window_bounds = array<i64: 2, 1>}, {transform_indices = @transform_9, window_bounds = array<i64: 2, 128>}]} {
    %c0 = arith.constant 0 : index
    %c0_0 = arith.constant 0 : index
    %0 = vector.load %arg1[%c0, %c0_0] : memref<2x128xf32, #tpu.memory_space<vmem>>, vector<2x128xf32>
    %c0_1 = arith.constant 0 : index
    %c0_2 = arith.constant 0 : index
    %1 = vector.load %arg2[%c0_1, %c0_2] : memref<64x2xf32, #tpu.memory_space<vmem>>, vector<64x1xf32>
    %2 = vector.extract_strided_slice %0 {offsets = [0, 0], sizes = [1, 128], strides = [1, 1]} : vector<2x128xf32> to vector<1x128xf32>
    %3 = vector.broadcast %1 : vector<64x1xf32> to vector<64x128xf32>
    %4 = vector.broadcast %2 : vector<1x128xf32> to vector<64x128xf32>
    %5 = arith.mulf %3, %4 : vector<64x128xf32>
    %c0_3 = arith.constant 0 : index
    %c1 = arith.constant 1 : index
    %6 = vector.load %arg2[%c0_3, %c1] : memref<64x2xf32, #tpu.memory_space<vmem>>, vector<64x1xf32>
    %7 = vector.extract_strided_slice %0 {offsets = [1, 0], sizes = [1, 128], strides = [1, 1]} : vector<2x128xf32> to vector<1x128xf32>
    %8 = vector.broadcast %6 : vector<64x1xf32> to vector<64x128xf32>
    %9 = vector.broadcast %7 : vector<1x128xf32> to vector<64x128xf32>
    %10 = arith.mulf %8, %9 : vector<64x128xf32>
    %11 = arith.addf %5, %10 : vector<64x128xf32>
    %c0_4 = arith.constant 0 : index
    %c0_5 = arith.constant 0 : index
    %12 = vector.load %arg3[%c0_4, %c0_5] : memref<64x1xf32, #tpu.memory_space<vmem>>, vector<64x1xf32>
    %13 = vector.broadcast %12 : vector<64x1xf32> to vector<64x128xf32>
    %14 = arith.addf %11, %13 : vector<64x128xf32>
    %cst = arith.constant 0.000000e+00 : f32
    %15 = vector.broadcast %cst : f32 to vector<64x128xf32>
    %16 = arith.maximumf %14, %15 : vector<64x128xf32>
    %cst_6 = arith.constant dense<0.000000e+00> : vector<128xf32>
    %17 = vector.multi_reduction <add>, %16, %cst_6 [0] : vector<64x128xf32> to vector<128xf32>
    %18 = vector.shape_cast %17 : vector<128xf32> to vector<1x128xf32>
    %cst_7 = arith.constant 6.400000e+01 : f32
    %19 = vector.broadcast %cst_7 : f32 to vector<1x128xf32>
    %20 = arith.divf %18, %19 : vector<1x128xf32>
    %21 = vector.broadcast %20 : vector<1x128xf32> to vector<64x128xf32>
    %22 = arith.subf %16, %21 : vector<64x128xf32>
    %23 = arith.mulf %22, %22 : vector<64x128xf32>
    %cst_8 = arith.constant dense<0.000000e+00> : vector<128xf32>
    %24 = vector.multi_reduction <add>, %23, %cst_8 [0] : vector<64x128xf32> to vector<128xf32>
    %25 = vector.shape_cast %24 : vector<128xf32> to vector<1x128xf32>
    %cst_9 = arith.constant 6.400000e+01 : f32
    %26 = vector.broadcast %cst_9 : f32 to vector<1x128xf32>
    %27 = arith.divf %25, %26 : vector<1x128xf32>
    %28 = vector.broadcast %20 : vector<1x128xf32> to vector<64x128xf32>
    %29 = arith.subf %16, %28 : vector<64x128xf32>
    %cst_10 = arith.constant 9.99999974E-6 : f32
    %30 = vector.broadcast %cst_10 : f32 to vector<1x128xf32>
    %31 = arith.addf %27, %30 : vector<1x128xf32>
    %32 = math.rsqrt %31 : vector<1x128xf32>
    %33 = vector.broadcast %32 : vector<1x128xf32> to vector<64x128xf32>
    %34 = arith.mulf %29, %33 : vector<64x128xf32>
    %c0_11 = arith.constant 0 : index
    %c0_12 = arith.constant 0 : index
    %35 = vector.load %arg4[%c0_11, %c0_12] : memref<32x64xf32, #tpu.memory_space<vmem>>, vector<32x64xf32>
    %cst_13 = arith.constant dense<0.000000e+00> : vector<32x128xf32>
    %36 = tpu.matmul %35, %34, %cst_13 {dimension_numbers = #tpu.dot_dimension_numbers<[1], [0], [0], [1], [0, 0, 1, 1], [], []>} : vector<32x64xf32>, vector<64x128xf32>, vector<32x128xf32> -> vector<32x128xf32>
    %c0_14 = arith.constant 0 : index
    %c0_15 = arith.constant 0 : index
    %37 = vector.load %arg5[%c0_14, %c0_15] : memref<32x1xf32, #tpu.memory_space<vmem>>, vector<32x1xf32>
    %38 = vector.broadcast %37 : vector<32x1xf32> to vector<32x128xf32>
    %39 = arith.addf %36, %38 : vector<32x128xf32>
    %c0_16 = arith.constant 0 : index
    %c0_17 = arith.constant 0 : index
    %40 = vector.load %arg6[%c0_16, %c0_17] : memref<32x1xf32, #tpu.memory_space<vmem>>, vector<32x1xf32>
    %c0_18 = arith.constant 0 : index
    %c0_19 = arith.constant 0 : index
    %41 = vector.load %arg7[%c0_18, %c0_19] : memref<32x1xf32, #tpu.memory_space<vmem>>, vector<32x1xf32>
    %cst_20 = arith.constant dense<0.000000e+00> : vector<128xf32>
    %42 = vector.multi_reduction <add>, %39, %cst_20 [0] : vector<32x128xf32> to vector<128xf32>
    %43 = vector.shape_cast %42 : vector<128xf32> to vector<1x128xf32>
    %cst_21 = arith.constant 3.200000e+01 : f32
    %44 = vector.broadcast %cst_21 : f32 to vector<1x128xf32>
    %45 = arith.divf %43, %44 : vector<1x128xf32>
    %46 = vector.broadcast %45 : vector<1x128xf32> to vector<32x128xf32>
    %47 = arith.subf %39, %46 : vector<32x128xf32>
    %48 = arith.mulf %47, %47 : vector<32x128xf32>
    %cst_22 = arith.constant dense<0.000000e+00> : vector<128xf32>
    %49 = vector.multi_reduction <add>, %48, %cst_22 [0] : vector<32x128xf32> to vector<128xf32>
    %50 = vector.shape_cast %49 : vector<128xf32> to vector<1x128xf32>
    %cst_23 = arith.constant 3.200000e+01 : f32
    %51 = vector.broadcast %cst_23 : f32 to vector<1x128xf32>
    %52 = arith.divf %50, %51 : vector<1x128xf32>
    %53 = vector.broadcast %45 : vector<1x128xf32> to vector<32x128xf32>
    %54 = arith.subf %39, %53 : vector<32x128xf32>
    %cst_24 = arith.constant 9.99999974E-6 : f32
    %55 = vector.broadcast %cst_24 : f32 to vector<1x128xf32>
    %56 = arith.addf %52, %55 : vector<1x128xf32>
    %57 = math.rsqrt %56 : vector<1x128xf32>
    %58 = vector.broadcast %57 : vector<1x128xf32> to vector<32x128xf32>
    %59 = arith.mulf %54, %58 : vector<32x128xf32>
    %60 = vector.broadcast %40 : vector<32x1xf32> to vector<32x128xf32>
    %61 = arith.mulf %59, %60 : vector<32x128xf32>
    %62 = vector.broadcast %41 : vector<32x1xf32> to vector<32x128xf32>
    %63 = arith.addf %61, %62 : vector<32x128xf32>
    %cst_25 = arith.constant 0.000000e+00 : f32
    %64 = vector.broadcast %cst_25 : f32 to vector<32x128xf32>
    %65 = arith.maximumf %63, %64 : vector<32x128xf32>
    %c0_26 = arith.constant 0 : index
    %c0_27 = arith.constant 0 : index
    %66 = vector.load %arg8[%c0_26, %c0_27] : memref<32x2xf32, #tpu.memory_space<vmem>>, vector<32x1xf32>
    %67 = vector.broadcast %66 : vector<32x1xf32> to vector<32x128xf32>
    %68 = arith.mulf %65, %67 : vector<32x128xf32>
    %cst_28 = arith.constant dense<0.000000e+00> : vector<128xf32>
    %69 = vector.multi_reduction <add>, %68, %cst_28 [0] : vector<32x128xf32> to vector<128xf32>
    %70 = vector.shape_cast %69 : vector<128xf32> to vector<1x128xf32>
    %c0_29 = arith.constant 0 : index
    %c0_30 = arith.constant 0 : index
    %71 = vector.load %arg9[%c0_29, %c0_30] : memref<2x1xf32, #tpu.memory_space<vmem>>, vector<1x1xf32>
    %72 = vector.broadcast %71 : vector<1x1xf32> to vector<1x128xf32>
    %73 = arith.addf %70, %72 : vector<1x128xf32>
    %c0_31 = arith.constant 0 : index
    %c1_32 = arith.constant 1 : index
    %74 = vector.load %arg8[%c0_31, %c1_32] : memref<32x2xf32, #tpu.memory_space<vmem>>, vector<32x1xf32>
    %75 = vector.broadcast %74 : vector<32x1xf32> to vector<32x128xf32>
    %76 = arith.mulf %65, %75 : vector<32x128xf32>
    %cst_33 = arith.constant dense<0.000000e+00> : vector<128xf32>
    %77 = vector.multi_reduction <add>, %76, %cst_33 [0] : vector<32x128xf32> to vector<128xf32>
    %78 = vector.shape_cast %77 : vector<128xf32> to vector<1x128xf32>
    %c1_34 = arith.constant 1 : index
    %c0_35 = arith.constant 0 : index
    %79 = vector.load %arg9[%c1_34, %c0_35] : memref<2x1xf32, #tpu.memory_space<vmem>>, vector<1x1xf32>
    %80 = vector.broadcast %79 : vector<1x1xf32> to vector<1x128xf32>
    %81 = arith.addf %78, %80 : vector<1x128xf32>
    %82 = tpu.concatenate %73, %81 in 0 : vector<1x128xf32>, vector<1x128xf32> -> vector<2x128xf32>
    %c0_36 = arith.constant 0 : index
    %c0_37 = arith.constant 0 : index
    %83 = vector.load %arg10[%c0_36, %c0_37] : memref<2x128xf32, #tpu.memory_space<vmem>>, vector<2x128xf32>
    tpu.vector_store %arg10[%c0_36, %c0_37], %82 {strides = array<i32>} : memref<2x128xf32, #tpu.memory_space<vmem>>, vector<2x128xf32>,
    return
  }
  func.func @transform_0(%arg0: i32) -> (i32, i32) {
    %c0_i32 = arith.constant 0 : i32
    %c0_i32_0 = arith.constant 0 : i32
    return %c0_i32, %arg0 : i32, i32
  }
  func.func @transform_1(%arg0: i32) -> (i32, i32) {
    %c0_i32 = arith.constant 0 : i32
    %c0_i32_0 = arith.constant 0 : i32
    %c0_i32_1 = arith.constant 0 : i32
    return %c0_i32, %c0_i32_0 : i32, i32
  }
  func.func @transform_2(%arg0: i32) -> (i32, i32) {
    %c0_i32 = arith.constant 0 : i32
    %c0_i32_0 = arith.constant 0 : i32
    %c0_i32_1 = arith.constant 0 : i32
    return %c0_i32, %c0_i32_0 : i32, i32
  }
  func.func @transform_3(%arg0: i32) -> (i32, i32) {
    %c0_i32 = arith.constant 0 : i32
    %c0_i32_0 = arith.constant 0 : i32
    %c0_i32_1 = arith.constant 0 : i32
    return %c0_i32, %c0_i32_0 : i32, i32
  }
  func.func @transform_4(%arg0: i32) -> (i32, i32) {
    %c0_i32 = arith.constant 0 : i32
    %c0_i32_0 = arith.constant 0 : i32
    %c0_i32_1 = arith.constant 0 : i32
    return %c0_i32, %c0_i32_0 : i32, i32
  }
  func.func @transform_5(%arg0: i32) -> (i32, i32) {
    %c0_i32 = arith.constant 0 : i32
    %c0_i32_0 = arith.constant 0 : i32
    %c0_i32_1 = arith.constant 0 : i32
    return %c0_i32, %c0_i32_0 : i32, i32
  }
  func.func @transform_6(%arg0: i32) -> (i32, i32) {
    %c0_i32 = arith.constant 0 : i32
    %c0_i32_0 = arith.constant 0 : i32
    %c0_i32_1 = arith.constant 0 : i32
    return %c0_i32, %c0_i32_0 : i32, i32
  }
  func.func @transform_7(%arg0: i32) -> (i32, i32) {
    %c0_i32 = arith.constant 0 : i32
    %c0_i32_0 = arith.constant 0 : i32
    %c0_i32_1 = arith.constant 0 : i32
    return %c0_i32, %c0_i32_0 : i32, i32
  }
  func.func @transform_8(%arg0: i32) -> (i32, i32) {
    %c0_i32 = arith.constant 0 : i32
    %c0_i32_0 = arith.constant 0 : i32
    %c0_i32_1 = arith.constant 0 : i32
    return %c0_i32, %c0_i32_0 : i32, i32
  }
  func.func @transform_9(%arg0: i32) -> (i32, i32) {
    %c0_i32 = arith.constant 0 : i32
    %c0_i32_0 = arith.constant 0 : i32
    return %c0_i32, %arg0 : i32, i32
  }
}

</mosaic_0001>

<bundles_post_ra>
// kernel: tpu_custom_call.1
= control target key start
LH: loop header
LB: loop body
LE: loop exit
PB: predicated region body
PF: predicated region fallthrough
CT: control target
= control target key end

     0   :  { %v693_v2 = vmov 1   ;;  %v694_v6 = vmov 0   ;;  %s899_s0 = inlined_call_operand.vmem [shape: f32[2,128], index: 0, kind: input, shape index: {}]   ;;  %s900_s1 = inlined_call_operand.vmem [shape: f32[64,2], index: 1, kind: input, shape index: {}]   ;;  %s901_s2 = inlined_call_operand.vmem [shape: f32[64,1], index: 2, kind: input, shape index: {}]   ;;  %s902_s3 = inlined_call_operand.vmem [shape: f32[32,64], index: 3, kind: input, shape index: {}]   ;;  %s903_s4 = inlined_call_operand.vmem [shape: f32[32,1], index: 4, kind: input, shape index: {}]   ;;  %s904_s5 = inlined_call_operand.vmem [shape: f32[32,1], index: 5, kind: input, shape index: {}]   ;;  %s905_s6 = inlined_call_operand.vmem [shape: f32[32,1], index: 6, kind: input, shape index: {}]   ;;  %s906_s7 = inlined_call_operand.vmem [shape: f32[32,2], index: 7, kind: input, shape index: {}]   ;;  %s907_s8 = inlined_call_operand.vmem [shape: f32[2,1], index: 8, kind: input, shape index: {}]   ;;  %s908_s9 = inlined_call_operand.hbm [shape: f32[2,128], index: 9, kind: output, shape index: {}]  }
   0x1   :  { %v39_v0 = vld [vmem:[%s900_s1 + $0x28] sm:$0xff]  ;;  %v34_v1 = vld [vmem:[%s900_s1] sm:$0xff]  ;;  %655 = vset.pattern.permute.xlu0 %v693_v2  ;;  %651 = vset.pattern.permute.xlu1 %v693_v2  ;;  %v40_v3 = vld [vmem:[%s900_s1 + $0x30] sm:$0xff] }
   0x2   :  { %115 = vperm.xlu0 %655, %v39_v0   ;;  %95 = vperm.xlu1 %651, %v34_v1   ;;  %v35_v4 = vld [vmem:[%s900_s1 + $0x8] sm:$0xff]  ;;  %v36_v5 = vld [vmem:[%s900_s1 + $0x10] sm:$0xff] }
   0x6   :  { %119 = vperm.xlu0 %655, %v40_v3   ;;  %99 = vperm.xlu1 %651, %v35_v4  }
   0xa   :  { %656 = vset.pattern.permute.xlu0 %v694_v6  ;;  %103 = vperm.xlu1 %651, %v36_v5  }
   0xb   :  { %14 = vsyncpa [#allocation3], 0  ;;  %44 = vperm.xlu0 %656, %v34_v1   ;;  %v37_v7 = vld [vmem:[%s900_s1 + $0x18] sm:$0xff]  ;;  %v147_v8 = vld [vmem:[%s901_s2 + $0x8] sm:$0xff]  ;;  %vm293_vm0 = vcmask 523264   ;;  %v82_v44 = vlaneseq  ;;  %vm569_vm1 = vcmask 1040384  }
   0xc   :  { %v38_v9 = vld [vmem:[%s900_s1 + $0x20] sm:$0xff]  ;;  %v149_v11 = vld [vmem:[%s901_s2 + $0x18] sm:$0xff]  ;;  %v148_v12 = vld [vmem:[%s901_s2 + $0x10] sm:$0xff] }
   0xd   :  { %v146_v10 = vld [vmem:[%s901_s2] sm:$0xff]  ;;  %v41_v13 = vld [vmem:[%s900_s1 + $0x38] sm:$0xff]  ;;  %v152_v15 = vld [vmem:[%s901_s2 + $0x30] sm:$0xff]  ;;  %v83_v48 = vshrl.u32 %v82_v44, 7 }
   0xe   :  { %107 = vperm.xlu1 %651, %v37_v7   ;;  %v150_v14 = vld [vmem:[%s901_s2 + $0x20] sm:$0xff]  ;;  %v271_v17 = vld [vmem:[%s903_s4 + $0x10] sm:$0xff]  ;;  %v151_v18 = vld [vmem:[%s901_s2 + $0x28] sm:$0xff] }
   0xf   :  { %49 = vperm.xlu0 %656, %v35_v4   ;;  %v269_v16 = vld [vmem:[%s903_s4] sm:$0xff]  ;;  %v153_v20 = vld [vmem:[%s901_s2 + $0x38] sm:$0xff]  ;;  %v393_v21 = vld [vmem:[%s904_s5 + $0x10] sm:$0xff]  ;;  %v84_v50 = vsub.s32 0, %v83_v48  ;;  %v128_v52 = vsub.s32 1, %v83_v48 }
  0x10   :  { %v391_v19 = vld [vmem:[%s904_s5] sm:$0xff]  ;;  %v270_v22 = vld [vmem:[%s903_s4 + $0x8] sm:$0xff]  ;;  %v272_v24 = vld [vmem:[%s903_s4 + $0x18] sm:$0xff] }
  0x11   :  { %v396_v23 = vld [vmem:[%s905_s6 + $0x8] sm:$0xff]  ;;  %v397_v25 = vld [vmem:[%s905_s6 + $0x10] sm:$0xff]  ;;  %v395_v28 = vld [vmem:[%s905_s6] sm:$0xff] }
  0x12   :  { %652 = vset.pattern.permute.xlu1 %v694_v6  ;;  %v392_v26 = vld [vmem:[%s904_s5 + $0x8] sm:$0xff]  ;;  %v394_v29 = vld [vmem:[%s904_s5 + $0x18] sm:$0xff]  ;;  %v265_v36 = vld [vmem:[%s902_s3] sm:$0xff] }
  0x13   :  { %54 = vperm.xlu0 %656, %v36_v5   ;;  %161 = vperm.xlu1 %652, %v147_v8   ;;  %v487_v27 = vld [vmem:[%s906_s7 + $0x8] sm:$0xff]  ;;  %v398_v30 = vld [vmem:[%s905_s6 + $0x18] sm:$0xff]  ;;  %v267_v37 = vld [vmem:[%s902_s3 + $0x10] sm:$0xff] }
  0x14   :  { %618 = vmatprep.mubr.msk.f32.mxu0 %vm293_vm0, %v265_v36  ;;  %621 = vmatprep.mubr.msk.f32.mxu1 %vm293_vm0, %v267_v37  ;;  %v486_v39 = vld [vmem:[%s906_s7] sm:$0xff]  ;;  %v488_v42 = vld [vmem:[%s906_s7 + $0x10] sm:$0xff]  ;;  %v489_v43 = vld [vmem:[%s906_s7 + $0x18] sm:$0xff] }
  0x15   :  { %v523_v47 = vld [vmem:[%s907_s8] sm:$0x1]  ;;  %v559_v57 = vld [vmem:[%s907_s8 + $0x1] sm:$0x1] }
  0x16   :  { %v33_v53 = vld [vmem:[%s899_s0] sm:$0x3] }
  0x17   :  { %59 = vperm.xlu0 %656, %v37_v7   ;;  %653 = vset.pattern.permute.xlu1 %v693_v2  ;;  %v85_v55 = vrot.slane %v33_v53, %v84_v50  ;;  %v129_v58 = vrot.slane %v33_v53, %v128_v52 }
  0x18   :  { %111 = vperm.xlu1 %653, %v38_v9  }
  0x1b   :  { %156 = vperm.xlu0 %656, %v146_v10  }
  0x1c   :  { %654 = vset.pattern.permute.xlu1 %v694_v6 }
  0x1d   :  { %69 = vperm.xlu1 %654, %v39_v0  }
  0x1f   :  { %64 = vperm.xlu0 %656, %v38_v9  }
  0x21   :  { %171 = vperm.xlu1 %654, %v149_v11  }
  0x23   :  { %166 = vperm.xlu0 %656, %v148_v12  }
  0x25   :  { %74 = vperm.xlu1 %654, %v40_v3  }
  0x27   :  { %79 = vperm.xlu0 %656, %v41_v13  }
  0x29   :  { %176 = vperm.xlu1 %654, %v150_v14  }
  0x2b   :  { %186 = vperm.xlu0 %656, %v152_v15  }
  0x2d   :  { %657 = vset.pattern.permute.xlu1 %v693_v2 }
  0x2e   :  { %123 = vperm.xlu1 %657, %v41_v13  }
  0x2f   :  { %275 = vperm.xlu0 %656, %v269_v16  }
  0x32   :  { %658 = vset.pattern.permute.xlu1 %v694_v6 }
  0x33   :  { %285 = vperm.xlu0 %656, %v271_v17   ;;  %181 = vperm.xlu1 %658, %v151_v18  }
  0x37   :  { %436 = vperm.xlu0 %656, %v391_v19   ;;  %191 = vperm.xlu1 %658, %v153_v20  }
  0x3b   :  { %446 = vperm.xlu0 %656, %v393_v21   ;;  %280 = vperm.xlu1 %658, %v270_v22  }
  0x3f   :  { %465 = vperm.xlu0 %656, %v396_v23   ;;  %290 = vperm.xlu1 %658, %v272_v24  }
  0x43   :  { %470 = vperm.xlu0 %656, %v397_v25   ;;  %441 = vperm.xlu1 %658, %v392_v26  }
  0x47   :  { %497 = vperm.xlu0 %656, %v487_v27   ;;  %460 = vperm.xlu1 %658, %v395_v28  }
  0x4b   :  { %451 = vperm.xlu1 %658, %v394_v29   ;;  %661 = vset.pattern.permute.xlu0 %v693_v2 }
  0x4c   :  { %531 = vperm.xlu0 %661, %v486_v39  }
  0x4f   :  { %475 = vperm.xlu1 %658, %v398_v30  }
  0x50   :  { %543 = vperm.xlu0 %661, %v489_v43  }
  0x53   :  { %659 = vset.pattern.permute.xlu1 %v693_v2 }
  0x54   :  { %535 = vperm.xlu1 %659, %v487_v27   ;;  %664 = vset.pattern.permute.xlu0 %v694_v6 }
  0x55   :  { %526 = vperm.xlu0 %664, %v523_v47  }
  0x58   :  { %660 = vset.pattern.permute.xlu1 %v694_v6 }
  0x59   :  { %492 = vperm.xlu1 %660, %v486_v39  }
  0x5d   :  { %662 = vset.pattern.permute.xlu1 %v693_v2 }
  0x5e   :  { %539 = vperm.xlu1 %662, %v488_v42  }
  0x62   :  { %663 = vset.pattern.permute.xlu1 %v694_v6 }
  0x63   :  { %502 = vperm.xlu1 %663, %v488_v42  }
  0x67   :  { %507 = vperm.xlu1 %663, %v489_v43  }
  0x6b   :  { %562 = vperm.xlu1 %663, %v559_v57  }
  0x81   :  { %v96_v31 = vpop.permute.xlu1 %95  ;;  %v844_v32 = vpop.permute.xlu0 %115 }
  0x82   :  { %v130_v63 = vmul.f32 %v129_v58, %v96_v31  ;;  %v135_v28 = vmul.f32 %v129_v58, %v844_v32 }
  0x85   :  { %v100_v33 = vpop.permute.xlu1 %99  ;;  %v846_v34 = vpop.permute.xlu0 %119 }
  0x86   :  { %v131_v0 = vmul.f32 %v129_v58, %v100_v33  ;;  %v136_v29 = vmul.f32 %v129_v58, %v846_v34 }
  0x89   :  { %v104_v35 = vpop.permute.xlu1 %103 }
  0x8a   :  { %v45_v38 = vpop.permute.xlu0 %44  ;;  %v132_v2 = vmul.f32 %v129_v58, %v104_v35 }
  0x8b   :  { %v86_v60 = vmul.f32 %v85_v55, %v45_v38 }
  0x8d   :  { %v108_v40 = vpop.permute.xlu1 %107  ;;  %v138_v4 = vadd.f32 %v130_v63, %v86_v60 }
  0x8e   :  { %v50_v41 = vpop.permute.xlu0 %49  ;;  %v133_v14 = vmul.f32 %v129_v58, %v108_v40 }
  0x8f   :  { %v87_v61 = vmul.f32 %v85_v55, %v50_v41 }
  0x91   :  { %v139_v3 = vadd.f32 %v131_v0, %v87_v61 }
  0x92   :  { %v55_v45 = vpop.permute.xlu0 %54  ;;  %v162_v46 = vpop.permute.xlu1 %161 }
  0x93   :  { %v88_v1 = vmul.f32 %v85_v55, %v55_v45  ;;  %v195_v9 = vadd.f32 %v162_v46, %v139_v3 }
  0x95   :  { %v140_v8 = vadd.f32 %v132_v2, %v88_v1  ;;  %v203_v18 = vmax.f32 %v195_v9, 0.0 }
  0x96   :  { %v60_v49 = vpop.permute.xlu0 %59 }
  0x97   :  { %v112_v51 = vpop.permute.xlu1 %111  ;;  %v89_v10 = vmul.f32 %v85_v55, %v60_v49 }
  0x98   :  { %v134_v15 = vmul.f32 %v129_v58, %v112_v51 }
  0x99   :  { %v141_v19 = vadd.f32 %v133_v14, %v89_v10 }
  0x9a   :  { %v157_v54 = vpop.permute.xlu0 %156 }
  0x9b   :  { %v194_v7 = vadd.f32 %v157_v54, %v138_v4 }
  0x9c   :  { %v70_v56 = vpop.permute.xlu1 %69 }
  0x9d   :  { %v202_v16 = vmax.f32 %v194_v7, 0.0  ;;  %v91_v22 = vmul.f32 %v85_v55, %v70_v56 }
  0x9e   :  { %v65_v59 = vpop.permute.xlu0 %64 }
  0x9f   :  { %v90_v11 = vmul.f32 %v85_v55, %v65_v59  ;;  %v210_v23 = vadd.f32 %v203_v18, %v202_v16  ;;  %v143_v33 = vadd.f32 %v135_v28, %v91_v22 }
  0xa0   :  { %v172_v62 = vpop.permute.xlu1 %171 }
  0xa1   :  { %v142_v21 = vadd.f32 %v134_v15, %v90_v11  ;;  %v197_v24 = vadd.f32 %v172_v62, %v141_v19 }
  0xa2   :  { %v167_v5 = vpop.permute.xlu0 %166 }
  0xa3   :  { %v196_v12 = vadd.f32 %v167_v5, %v140_v8  ;;  %v205_v35 = vmax.f32 %v197_v24, 0.0 }
  0xa4   :  { %v75_v6 = vpop.permute.xlu1 %74 }
  0xa5   :  { %v204_v20 = vmax.f32 %v196_v12, 0.0  ;;  %v92_v25 = vmul.f32 %v85_v55, %v75_v6 }
  0xa6   :  { %v80_v17 = vpop.permute.xlu0 %79 }
  0xa7   :  { %v211_v30 = vadd.f32 %v210_v23, %v204_v20  ;;  %v144_v37 = vadd.f32 %v136_v29, %v92_v25  ;;  %v93_v40 = vmul.f32 %v85_v55, %v80_v17 }
  0xa8   :  { %v177_v13 = vpop.permute.xlu1 %176 }
  0xa9   :  { %v198_v26 = vadd.f32 %v177_v13, %v142_v21  ;;  %v212_v41 = vadd.f32 %v211_v30, %v205_v35 }
  0xaa   :  { %v187_v31 = vpop.permute.xlu0 %186 }
  0xab   :  { %v206_v36 = vmax.f32 %v198_v26, 0.0  ;;  %v200_v42 = vadd.f32 %v187_v31, %v144_v37 }
  0xad   :  { %v124_v27 = vpop.permute.xlu1 %123  ;;  %v213_v44 = vadd.f32 %v212_v41, %v206_v36  ;;  %v208_v48 = vmax.f32 %v200_v42, 0.0  ;;  %v266_v41 = vld [vmem:[%s902_s3 + $0x8] sm:$0xff]  ;;  %v268_v42 = vld [vmem:[%s902_s3 + $0x18] sm:$0xff]  ;;  %s695_s3 = smov [#allocation2]  }
  0xae   :  { %v137_v38 = vmul.f32 %v129_v58, %v124_v27  ;;  %s578_s14 = sshll.u32 %s695_s3, 4  ;;  %s579_s14 = int_to_ptr.vmem [resolvable:$true] %s578_s14 }
  0xaf   :  { %s669_s15 = scalar_lea.vmem %s579_s14, 32  ;;  %p674_p1 = scmp.lt.s32.totalorder %s579_s14, %s579_s14 }
  0xb0   :  { %v145_v46 = vadd.f32 %v137_v38, %v93_v40  ;;  %p670_p0 = scmp.ne.s32.totalorder %s579_s14, %s669_s15  ;;  %p675_p2 = scmp.lt.s32.totalorder %s669_s15, %s669_s15 }
  0xb2   :  { %v182_v39 = vpop.permute.xlu1 %181  ;;  %p676_p3 = por %p675_p2, %p674_p1 }
  0xb3   :  { %v199_v43 = vadd.f32 %v182_v39, %v143_v33 }
  0xb4   :  { %p677_p4 = pnand %p676_p3, %p670_p0 }
  0xb5   :  { %v207_v45 = vmax.f32 %v199_v43, 0.0  ;;  %v276_v43 = vpop.permute.xlu0 %275 }
  0xb6   :  { %v192_v47 = vpop.permute.xlu1 %191 }
  0xb7   :  { %v214_v32 = vadd.f32 %v213_v44, %v207_v45  ;;  %v201_v49 = vadd.f32 %v192_v47, %v145_v46 }
  0xb9   :  { %v209_v34 = vmax.f32 %v201_v49, 0.0  ;;  %v215_v50 = vadd.f32 %v214_v32, %v208_v48 }
  0xba   :  { %v281_v44 = vpop.permute.xlu1 %280 }
  0xbb   :  { %v216_v51 = vadd.f32 %v215_v50, %v209_v34 }
  0xbd   :  { %v217_v52 = vrot.slane %v216_v51, 4 }
  0xbf   :  { %v218_v53 = vadd.f32 %v217_v52, %v216_v51  ;;  %v291_v52 = vpop.permute.xlu1 %290 }
  0xc1   :  { %v219_v54 = vrot.slane %v218_v53, 2 }
  0xc3   :  { %v220_v56 = vadd.f32 %v219_v54, %v218_v53 }
  0xc5   :  { %v221_v57 = vrot.slane %v220_v56, 1 }
  0xc7   :  { %v222_v58 = vadd.f32 %v221_v57, %v220_v56 }
  0xc9   :  { %v224_v55 = vmul.f32 0.015625, %v222_v58 }
  0xcb   :  { %v225_v59 = vsub.f32 %v202_v16, %v224_v55  ;;  %v226_v60 = vsub.f32 %v203_v18, %v224_v55  ;;  %v227_v61 = vsub.f32 %v204_v20, %v224_v55  ;;  %v228_v62 = vsub.f32 %v205_v35, %v224_v55 }
  0xcc   :  { %v229_v1 = vsub.f32 %v206_v36, %v224_v55  ;;  %v230_v4 = vsub.f32 %v207_v45, %v224_v55  ;;  %v231_v7 = vsub.f32 %v208_v48, %v224_v55  ;;  %v232_v10 = vsub.f32 %v209_v34, %v224_v55  ;;  %v286_v34 = vpop.permute.xlu0 %285 }
  0xcd   :  { %v233_v63 = vmul.f32 %v225_v59, %v225_v59  ;;  %v234_v0 = vmul.f32 %v226_v60, %v226_v60  ;;  %v235_v2 = vmul.f32 %v227_v61, %v227_v61  ;;  %v236_v5 = vmul.f32 %v228_v62, %v228_v62 }
  0xce   :  { %v237_v8 = vmul.f32 %v229_v1, %v229_v1  ;;  %v238_v11 = vmul.f32 %v230_v4, %v230_v4  ;;  %v239_v13 = vmul.f32 %v231_v7, %v231_v7  ;;  %v240_v15 = vmul.f32 %v232_v10, %v232_v10 }
  0xcf   :  { %v241_v3 = vadd.f32 %v234_v0, %v233_v63 }
  0xd1   :  { %v242_v6 = vadd.f32 %v241_v3, %v235_v2  ;;  %v442_v3 = vpop.permute.xlu1 %441 }
  0xd3   :  { %v243_v9 = vadd.f32 %v242_v6, %v236_v5 }
  0xd5   :  { %v244_v12 = vadd.f32 %v243_v9, %v237_v8 }
  0xd7   :  { %v245_v14 = vadd.f32 %v244_v12, %v238_v11 }
  0xd9   :  { %v246_v16 = vadd.f32 %v245_v14, %v239_v13  ;;  %v437_v14 = vpop.permute.xlu0 %436 }
  0xdb   :  { %v247_v17 = vadd.f32 %v246_v16, %v240_v15 }
  0xdd   :  { %v248_v18 = vrot.slane %v247_v17, 4 }
  0xdf   :  { %v249_v19 = vadd.f32 %v248_v18, %v247_v17 }
  0xe1   :  { %v250_v20 = vrot.slane %v249_v19, 2 }
  0xe3   :  { %v251_v21 = vadd.f32 %v250_v20, %v249_v19  ;;  %v447_v19 = vpop.permute.xlu0 %446 }
  0xe5   :  { %v252_v22 = vrot.slane %v251_v21, 1 }
  0xe7   :  { %v253_v23 = vadd.f32 %v252_v22, %v251_v21 }
  0xe9   :  { %v254_v24 = vmul.f32 0.015625, %v253_v23 }
  0xeb   :  { %v255_v25 = vadd.f32 1e-05, %v254_v24 }
  0xed   :  { %665 = vrsqrt.f32 %v255_v25  ;;  %v466_v25 = vpop.permute.xlu0 %465 }
  0xf7   :  { %v666_v26 = vpop.eup %665 }
  0xf8   :  { %v257_v27 = vmul.f32 %v666_v26, %v225_v59  ;;  %v258_v28 = vmul.f32 %v666_v26, %v226_v60  ;;  %v259_v29 = vmul.f32 %v666_v26, %v227_v61  ;;  %v260_v30 = vmul.f32 %v666_v26, %v228_v62 }
  0xf9   :  { %v261_v35 = vmul.f32 %v666_v26, %v229_v1  ;;  %v262_v36 = vmul.f32 %v666_v26, %v230_v4  ;;  %v263_v37 = vmul.f32 %v666_v26, %v231_v7  ;;  %v264_v38 = vmul.f32 %v666_v26, %v232_v10  ;;  %v461_v10 = vpop.permute.xlu1 %460 }
  0xfa   :  { %v624_v31 = vpack.c.bf16 %v258_v28, %v257_v27  ;;  %v628_v33 = vpack.c.bf16 %v260_v30, %v259_v29  ;;  %v471_v27 = vpop.permute.xlu0 %470 }
  0xfb   :  { %v632_v39 = vpack.c.bf16 %v262_v36, %v261_v35  ;;  %v636_v40 = vpack.c.bf16 %v264_v38, %v263_v37 }
  0xfc   :  { %625 = vmatprep.subr.bf16.mxu0 %v624_v31  ;;  %640 = vmatprep.subr.bf16.mxu1 %v624_v31 }
  0xfd   :  { %627 = vmatpush3.bf16.msra.mxu0 %v624_v31  ;;  %644 = vmatpush3.bf16.msra.mxu1 %v624_v31  ;;  %v452_v15 = vpop.permute.xlu1 %451 }
  0xfe   :  { %629 = vmatprep.subr.bf16.mxu0 %v628_v33  ;;  %641 = vmatprep.subr.bf16.mxu1 %v628_v33  ;;  %v498_v30 = vpop.permute.xlu0 %497 }
 0x101   :  { %631 = vmatpush3.bf16.msra.mxu0 %v628_v33  ;;  %645 = vmatpush3.bf16.msra.mxu1 %v628_v33  ;;  %v476_v20 = vpop.permute.xlu1 %475 }
 0x102   :  { %633 = vmatprep.subr.bf16.mxu0 %v632_v39  ;;  %642 = vmatprep.subr.bf16.mxu1 %v632_v39 }
 0x105   :  { %635 = vmatpush3.bf16.msra.mxu0 %v632_v39  ;;  %646 = vmatpush3.bf16.msra.mxu1 %v632_v39  ;;  %v536_v24 = vpop.permute.xlu1 %535 }
 0x106   :  { %637 = vmatprep.subr.bf16.mxu0 %v636_v40  ;;  %643 = vmatprep.subr.bf16.mxu1 %v636_v40 }
 0x109   :  { %639 = vmatpush3.bf16.msra.mxu0 %v636_v40  ;;  %647 = vmatpush3.bf16.msra.mxu1 %v636_v40  ;;  %v493_v26 = vpop.permute.xlu1 %492 }
 0x10c   :  { %619 = vmatmul.mubr.msk.f32.vlgmr.msra.gmra.mrb[0].mxu0 %vm293_vm0, %v266_v41  ;;  %622 = vmatmul.mubr.msk.f32.vlgmr.msra.gmra.mrb[0].mxu1 %vm293_vm0, %v268_v42 }
 0x10d   :  { %v540_v29 = vpop.permute.xlu1 %539 }
 0x1df   :  { %v620_v45 = vpop.f32.mrb[0].mxu0  ;;  %v623_v46 = vpop.f32.mrb[0].mxu1 }
 0x1e0   :  { %v378_v47 = vadd.f32 %v620_v45, %v281_v44  ;;  %v372_v48 = vpop.f32.mrb[1].mxu0  ;;  %v382_v32 = vpop.f32.mrb[1].mxu1  ;;  %v388_v53 = vadd.f32 %v623_v46, %v291_v52 }
 0x1e1   :  { %v373_v49 = vadd.f32 %v372_v48, %v276_v43  ;;  %v383_v51 = vadd.f32 %v382_v32, %v286_v34  ;;  %v532_v44 = vpop.permute.xlu0 %531  ;;  %v503_v46 = vpop.permute.xlu1 %502 }
 0x1e3   :  { %v399_v50 = vadd.f32 %v378_v47, %v373_v49 }
 0x1e5   :  { %v400_v54 = vadd.f32 %v399_v50, %v383_v51 }
 0x1e7   :  { %v401_v56 = vadd.f32 %v400_v54, %v388_v53 }
 0x1e9   :  { %v402_v57 = vrot.slane %v401_v56, 4 }
 0x1eb   :  { %v403_v58 = vadd.f32 %v402_v57, %v401_v56  ;;  %v544_v56 = vpop.permute.xlu0 %543 }
 0x1ed   :  { %v404_v55 = vrot.slane %v403_v58, 2 }
 0x1ef   :  { %v405_v59 = vadd.f32 %v404_v55, %v403_v58  ;;  %v508_v55 = vpop.permute.xlu1 %507 }
 0x1f1   :  { %v406_v60 = vrot.slane %v405_v59, 1 }
 0x1f3   :  { %v407_v61 = vadd.f32 %v406_v60, %v405_v59 }
 0x1f5   :  { %v409_v62 = vmul.f32 0.03125, %v407_v61 }
 0x1f7   :  { %v410_v63 = vsub.f32 %v373_v49, %v409_v62  ;;  %v411_v0 = vsub.f32 %v378_v47, %v409_v62  ;;  %v412_v1 = vsub.f32 %v383_v51, %v409_v62  ;;  %v413_v2 = vsub.f32 %v388_v53, %v409_v62 }
 0x1f9   :  { %v414_v4 = vmul.f32 %v410_v63, %v410_v63  ;;  %v415_v5 = vmul.f32 %v411_v0, %v411_v0  ;;  %v416_v6 = vmul.f32 %v412_v1, %v412_v1  ;;  %v417_v8 = vmul.f32 %v413_v2, %v413_v2 }
 0x1fb   :  { %v418_v7 = vadd.f32 %v415_v5, %v414_v4 }
 0x1fd   :  { %v419_v9 = vadd.f32 %v418_v7, %v416_v6 }
 0x1ff   :  { %v420_v11 = vadd.f32 %v419_v9, %v417_v8 }
 0x201   :  { %v421_v12 = vrot.slane %v420_v11, 4 }
 0x203   :  { %v422_v13 = vadd.f32 %v421_v12, %v420_v11 }
 0x205   :  { %v423_v16 = vrot.slane %v422_v13, 2 }
 0x207   :  { %v424_v17 = vadd.f32 %v423_v16, %v422_v13  ;;  %v563_v13 = vpop.permute.xlu1 %562 }
 0x209   :  { %v425_v18 = vrot.slane %v424_v17, 1 }
 0x20b   :  { %v426_v21 = vadd.f32 %v425_v18, %v424_v17 }
 0x20d   :  { %v427_v22 = vmul.f32 0.03125, %v426_v21 }
 0x20f   :  { %v428_v23 = vadd.f32 1e-05, %v427_v22 }
 0x211   :  { %667 = vrsqrt.f32 %v428_v23 }
 0x21b   :  { %v668_v28 = vpop.eup %667 }
 0x21c   :  { %v432_v31 = vmul.f32 %v668_v28, %v412_v1  ;;  %v431_v33 = vmul.f32 %v668_v28, %v411_v0  ;;  %v430_v35 = vmul.f32 %v668_v28, %v410_v63  ;;  %v433_v36 = vmul.f32 %v668_v28, %v413_v2 }
 0x21e   :  { %v455_v37 = vmul.f32 %v442_v3, %v431_v33  ;;  %v454_v38 = vmul.f32 %v437_v14, %v430_v35  ;;  %v456_v39 = vmul.f32 %v447_v19, %v432_v31  ;;  %v457_v40 = vmul.f32 %v452_v15, %v433_v36  ;;  %v527_v14 = vpop.permute.xlu0 %526 }
 0x220   :  { %v479_v41 = vadd.f32 %v466_v25, %v455_v37  ;;  %v478_v42 = vadd.f32 %v461_v10, %v454_v38  ;;  %v480_v43 = vadd.f32 %v471_v27, %v456_v39  ;;  %v481_v45 = vadd.f32 %v476_v20, %v457_v40 }
 0x222   :  { %v483_v47 = vmax.f32 %v479_v41, 0.0  ;;  %v482_v48 = vmax.f32 %v478_v42, 0.0  ;;  %v484_v32 = vmax.f32 %v480_v43, 0.0  ;;  %v485_v51 = vmax.f32 %v481_v45, 0.0 }
 0x224   :  { %v547_v49 = vmul.f32 %v536_v24, %v483_v47  ;;  %v510_v34 = vmul.f32 %v493_v26, %v482_v48  ;;  %v511_v50 = vmul.f32 %v498_v30, %v483_v47  ;;  %v546_v52 = vmul.f32 %v532_v44, %v482_v48 }
 0x225   :  { %v512_v54 = vmul.f32 %v503_v46, %v484_v32  ;;  %v548_v57 = vmul.f32 %v540_v29, %v484_v32  ;;  %v513_v60 = vmul.f32 %v508_v55, %v485_v51  ;;  %v549_v61 = vmul.f32 %v544_v56, %v485_v51 }
 0x226   :  { %v514_v53 = vadd.f32 %v511_v50, %v510_v34  ;;  %v550_v58 = vadd.f32 %v547_v49, %v546_v52 }
 0x228   :  { %v515_v59 = vadd.f32 %v514_v53, %v512_v54  ;;  %v551_v62 = vadd.f32 %v550_v58, %v548_v57 }
 0x22a   :  { %v516_v63 = vadd.f32 %v515_v59, %v513_v60  ;;  %v552_v0 = vadd.f32 %v551_v62, %v549_v61 }
 0x22c   :  { %v517_v1 = vrot.slane %v516_v63, 4  ;;  %v553_v2 = vrot.slane %v552_v0, 4 }
 0x22e   :  { %v518_v3 = vadd.f32 %v517_v1, %v516_v63  ;;  %v554_v4 = vadd.f32 %v553_v2, %v552_v0 }
 0x230   :  { %v519_v5 = vrot.slane %v518_v3, 2  ;;  %v555_v6 = vrot.slane %v554_v4, 2 }
 0x232   :  { %v520_v7 = vadd.f32 %v519_v5, %v518_v3  ;;  %v556_v8 = vadd.f32 %v555_v6, %v554_v4 }
 0x234   :  { %v521_v9 = vrot.slane %v520_v7, 1  ;;  %v557_v10 = vrot.slane %v556_v8, 1 }
 0x236   :  { %v558_v11 = vadd.f32 %v557_v10, %v556_v8  ;;  %v522_v12 = vadd.f32 %v521_v9, %v520_v7 }
 0x238   :  { %v565_v15 = vadd.f32 %v563_v13, %v558_v11  ;;  %v529_v17 = vadd.f32 %v527_v14, %v522_v12 }
 0x23a   :  { %v567_v16 = vrot.slane %v565_v15, 7 }
 0x23c   :  { %v570_v18 = vsel %vm569_vm1, %v529_v17, %v567_v16 }
 0x23d   :  { %571 = vst [vmem:[#allocation2] sm:$0x3] %v570_v18 }
 0x23e   :  { %680 = shalt.err (!%p677_p4)
}
 0x23f   :  { %s681_s1 = scalar_lea.hbm %s908_s9, 32 }
 0x240   :  { %p682_p5 = scmp.ne.s32.totalorder %s908_s9, %s681_s1  ;;  %p685_p6 = scmp.lt.u32.totalorder %s681_s1, %s908_s9 }
 0x242   :  { %p687_p7 = pnand %p685_p6, %p682_p5 }
 0x244   :  { %690 = shalt.err (!%p687_p7)
}
 0x245   :  { %581 = dma.vmem_to_hbm [thread:$0]  %s579_s14, 32, %s908_s9, [#allocation3]  }
 0x246   :  { %691 = dma.done.wait [#allocation3], 32  }
 0x247   :  { %692 = vsyncadd [#allocation3], 4294967264 }
 0x248   :  { %585 = vsyncpa [#allocation3], 1 }

</bundles_post_ra>
